<compile_context>
chip_gen: v6e
topology: v6e:2x2x1
jax: 0.10.0
libtpu: 0.0.40
codegen_flags: <defaults>
</compile_context>

<pallas_src>
import jax
import jax.numpy as jnp
from jax.experimental import pallas as pl
from jax.experimental.pallas import tpu as pltpu

LN_EPS = 1e-5
LANE = 128


def _round_up(x, m):
    return ((x + m - 1) // m) * m


# ---------------------------------------------------------------------------
# Kernel
# ---------------------------------------------------------------------------
def _make_kernel(repr_dim, feature_dim, action_dim, hidden_dim, offs):
    H2 = 2 * hidden_dim
    o_wt, o_w1h, o_w1a, o_w2, o_w3 = offs

    def kernel(obs_ref, act_ref, w_ref, v_ref, out_ref):
        obs = obs_ref[...]
        act = act_ref[...]

        # ---- trunk: Linear -> LayerNorm -> Tanh ----
        wt = w_ref[o_wt:o_wt + repr_dim, :feature_dim]
        bt = v_ref[0:1, :feature_dim]
        g = v_ref[1:2, :feature_dim]
        be = v_ref[2:3, :feature_dim]

        h = jnp.dot(obs, wt, preferred_element_type=jnp.float32) + bt
        mu = jnp.mean(h, axis=-1, keepdims=True)
        var = jnp.mean((h - mu) * (h - mu), axis=-1, keepdims=True)
        h = jnp.tanh((h - mu) * jax.lax.rsqrt(var + LN_EPS) * g + be)

        # ---- fused Q1/Q2 MLP (block-diagonal weights) ----
        w1h = w_ref[o_w1h:o_w1h + feature_dim, :H2]
        w1a = w_ref[o_w1a:o_w1a + action_dim, :H2]
        w2 = w_ref[o_w2:o_w2 + H2, :H2]
        w3 = w_ref[o_w3:o_w3 + H2, :2]
        b1 = v_ref[3:4, :H2]
        b2 = v_ref[4:5, :H2]
        b3 = v_ref[5:6, :2]

        z = (jnp.dot(h, w1h, preferred_element_type=jnp.float32)
             + jnp.dot(act, w1a, preferred_element_type=jnp.float32)
             + b1)
        z = jnp.maximum(z, 0.0)
        z = jnp.maximum(jnp.dot(z, w2, preferred_element_type=jnp.float32) + b2, 0.0)
        out_ref[...] = jnp.dot(z, w3, preferred_element_type=jnp.float32) + b3

    return kernel


# ---------------------------------------------------------------------------
# Parameter packing (natural per-layer params -> 2 packed VMEM slabs)
# ---------------------------------------------------------------------------
def pack_params(params, repr_dim, feature_dim, action_dim, hidden_dim):
    (wt, bt, gamma, beta,
     w1h, w1a, b1, w2, b2, w3, b3,
     v1h, v1a, c1, v2, c2, v3, c3) = params
    H = hidden_dim
    H2 = 2 * H
    zH = jnp.zeros((H, H), jnp.float32)
    z1 = jnp.zeros((H, 1), jnp.float32)

    # fused Q weights / biases
    W1h = jnp.concatenate([w1h, v1h], axis=1)                       # (feat, 2H)
    W1a = jnp.concatenate([w1a, v1a], axis=1)                       # (act, 2H)
    W2 = jnp.concatenate(
        [jnp.concatenate([w2, zH], axis=1),
         jnp.concatenate([zH, v2], axis=1)], axis=0)                # (2H, 2H)
    W3 = jnp.concatenate(
        [jnp.concatenate([w3, z1], axis=1),
         jnp.concatenate([z1, v3], axis=1)], axis=0)                # (2H, 2)
    B1 = jnp.concatenate([b1, c1], axis=1)                          # (1, 2H)
    B2 = jnp.concatenate([b2, c2], axis=1)                          # (1, 2H)
    B3 = jnp.concatenate([b3, c3], axis=1)                          # (1, 2)

    def pad_to(x, rows, lanes):
        return jnp.pad(x, ((0, rows - x.shape[0]), (0, lanes - x.shape[1])))

    segs = [wt, W1h, W1a, W2, W3]
    offs, blocks, cur = [], [], 0
    for m in segs:
        offs.append(cur)
        rows = _round_up(m.shape[0], 8)
        blocks.append(pad_to(m, rows, LANE))
        cur += rows
    w_slab = jnp.concatenate(blocks, axis=0)                        # (cur, 128)

    v_rows = [bt, gamma, beta, B1, B2, B3]
    v_slab = jnp.concatenate(
        [jnp.pad(v, ((0, 0), (0, LANE - v.shape[1]))) for v in v_rows], axis=0)
    v_slab = jnp.pad(v_slab, ((0, 8 - v_slab.shape[0]), (0, 0)))    # (8, 128)

    return w_slab, v_slab, tuple(offs)


# ---------------------------------------------------------------------------
# Wrapper
# ---------------------------------------------------------------------------
def critic_forward(obs, action, packed, dims):
    repr_dim, feature_dim, action_dim, hidden_dim = dims
    w_slab, v_slab, offs = packed
    B = obs.shape[0]

    # batch tiling: pad to a multiple of the row tile, weights stay resident
    Bp = _round_up(B, 8)
    TB = min(Bp, 256)
    Bp = _round_up(Bp, TB)
    if Bp != B:
        obs = jnp.pad(obs, ((0, Bp - B), (0, 0)))
        action = jnp.pad(action, ((0, Bp - B), (0, 0)))
    grid = (pl.cdiv(Bp, TB),)

    kernel = _make_kernel(repr_dim, feature_dim, action_dim, hidden_dim, offs)

    out = pl.pallas_call(
        kernel,
        out_shape=jax.ShapeDtypeStruct((Bp, 2), jnp.float32),
        grid=grid,
        in_specs=[
            pl.BlockSpec((TB, repr_dim), lambda i: (i, 0)),
            pl.BlockSpec((TB, action_dim), lambda i: (i, 0)),
            pl.BlockSpec(w_slab.shape, lambda i: (0, 0)),   # resident weights
            pl.BlockSpec(v_slab.shape, lambda i: (0, 0)),   # resident biases
        ],
        out_specs=pl.BlockSpec((TB, 2), lambda i: (i, 0)),
        compiler_params=pltpu.CompilerParams(
            dimension_semantics=("parallel",)),
    )(obs, action, w_slab, v_slab)

    q = out[:B]
    return q[:, 0:1], q[:, 1:2]


# ---------------------------------------------------------------------------
# Synthetic params + pure-JAX reference (mirrors the PyTorch module)
# ---------------------------------------------------------------------------
def make_params(key, repr_dim, feature_dim, action_dim, hidden_dim):
    keys = jax.random.split(key, 16)
    k = iter(keys)

    def w(shape):
        return jax.random.normal(next(k), shape, jnp.float32) * 0.1

    wt = w((repr_dim, feature_dim))
    bt = jnp.zeros((1, feature_dim), jnp.float32)
    gamma = jnp.ones((1, feature_dim), jnp.float32)
    beta = jnp.zeros((1, feature_dim), jnp.float32)

    def q_params():
        w1h = w((feature_dim, hidden_dim))
        w1a = w((action_dim, hidden_dim))
        b1 = jnp.zeros((1, hidden_dim), jnp.float32)
        w2 = w((hidden_dim, hidden_dim))
        b2 = jnp.zeros((1, hidden_dim), jnp.float32)
        w3 = w((hidden_dim, 1))
        b3 = jnp.zeros((1, 1), jnp.float32)
        return [w1h, w1a, b1, w2, b2, w3, b3]

    return [wt, bt, gamma, beta] + q_params() + q_params()


def critic_reference(obs, action, params):
    (wt, bt, gamma, beta,
     w1h, w1a, b1, w2, b2, w3, b3,
     v1h, v1a, c1, v2, c2, v3, c3) = params
    h = obs @ wt + bt
    mu = jnp.mean(h, axis=-1, keepdims=True)
    var = jnp.mean((h - mu) ** 2, axis=-1, keepdims=True)
    h = jnp.tanh((h - mu) / jnp.sqrt(var + LN_EPS) * gamma + beta)
    ha = jnp.concatenate([h, action], axis=-1)

    def mlp(wh, wa, b1_, w2_, b2_, w3_, b3_):
        W1 = jnp.concatenate([wh, wa], axis=0)
        z = jnp.maximum(ha @ W1 + b1_, 0.0)
        z = jnp.maximum(z @ w2_ + b2_, 0.0)
        return z @ w3_ + b3_

    return (mlp(w1h, w1a, b1, w2, b2, w3, b3),
            mlp(v1h, v1a, c1, v2, c2, v3, c3))


if __name__ == "__main__":
    B, REPR_DIM, FEATURE_DIM, ACTION_DIM, HIDDEN_DIM = 8, 64, 32, 6, 32

    key = jax.random.PRNGKey(0)
    k_obs, k_act, k_par = jax.random.split(key, 3)
    obs = jax.random.normal(k_obs, (B, REPR_DIM), jnp.float32)
    action = jax.random.normal(k_act, (B, ACTION_DIM), jnp.float32)
    params = make_params(k_par, REPR_DIM, FEATURE_DIM, ACTION_DIM, HIDDEN_DIM)
    packed = pack_params(params, REPR_DIM, FEATURE_DIM, ACTION_DIM, HIDDEN_DIM)

    q1, q2 = critic_forward(obs, action, packed,
                            (REPR_DIM, FEATURE_DIM, ACTION_DIM, HIDDEN_DIM))
    jax.block_until_ready((q1, q2))

    q1_ref, q2_ref = critic_reference(obs, action, params)
    assert jnp.allclose(q1, q1_ref, atol=1e-4, rtol=1e-4)
    assert jnp.allclose(q2, q2_ref, atol=1e-4, rtol=1e-4)

    print("KERNEL_OK")
</pallas_src>

<mosaic_0001>
module attributes {stable_mosaic.version = 11 : i64} {
  func.func @kernel(%arg0: i32, %arg1: memref<8x64xf32, #tpu.memory_space<vmem>>, %arg2: memref<8x6xf32, #tpu.memory_space<vmem>>, %arg3: memref<232x128xf32, #tpu.memory_space<vmem>>, %arg4: memref<8x128xf32, #tpu.memory_space<vmem>>, %arg5: memref<8x2xf32, #tpu.memory_space<vmem>>) attributes {dimension_semantics = [#tpu.dimension_semantics<parallel>], iteration_bounds = array<i64: 1>, scalar_prefetch = 0 : i64, scratch_operands = 0 : i64, tpu.core_type = #tpu.core_type<tc>, window_params = [{transform_indices = @transform_0, window_bounds = array<i64: 8, 64>}, {transform_indices = @transform_1, window_bounds = array<i64: 8, 6>}, {pipeline_mode = #tpu.pipeline_mode<synchronous>, transform_indices = @transform_2, window_bounds = array<i64: 232, 128>}, {pipeline_mode = #tpu.pipeline_mode<synchronous>, transform_indices = @transform_3, window_bounds = array<i64: 8, 128>}, {transform_indices = @transform_4, window_bounds = array<i64: 8, 2>}]} {
    %c0 = arith.constant 0 : index
    %c0_0 = arith.constant 0 : index
    %0 = vector.load %arg1[%c0, %c0_0] : memref<8x64xf32, #tpu.memory_space<vmem>>, vector<8x64xf32>
    %c0_1 = arith.constant 0 : index
    %c0_2 = arith.constant 0 : index
    %1 = vector.load %arg2[%c0_1, %c0_2] : memref<8x6xf32, #tpu.memory_space<vmem>>, vector<8x6xf32>
    %c0_3 = arith.constant 0 : index
    %c0_4 = arith.constant 0 : index
    %2 = vector.load %arg3[%c0_3, %c0_4] : memref<232x128xf32, #tpu.memory_space<vmem>>, vector<64x32xf32>
    %c0_5 = arith.constant 0 : index
    %c0_6 = arith.constant 0 : index
    %3 = vector.load %arg4[%c0_5, %c0_6] : memref<8x128xf32, #tpu.memory_space<vmem>>, vector<1x32xf32>
    %c1 = arith.constant 1 : index
    %c0_7 = arith.constant 0 : index
    %4 = vector.load %arg4[%c1, %c0_7] : memref<8x128xf32, #tpu.memory_space<vmem>>, vector<1x32xf32>
    %c2 = arith.constant 2 : index
    %c0_8 = arith.constant 0 : index
    %5 = vector.load %arg4[%c2, %c0_8] : memref<8x128xf32, #tpu.memory_space<vmem>>, vector<1x32xf32>
    %cst = arith.constant dense<0.000000e+00> : vector<8x32xf32>
    %6 = tpu.matmul %0, %2, %cst {dimension_numbers = #tpu.dot_dimension_numbers<[1], [0], [0], [1], [0, 0, 1, 1], [], []>} : vector<8x64xf32>, vector<64x32xf32>, vector<8x32xf32> -> vector<8x32xf32>
    %7 = vector.broadcast %3 : vector<1x32xf32> to vector<8x32xf32>
    %8 = arith.addf %6, %7 : vector<8x32xf32>
    %cst_9 = arith.constant dense<0.000000e+00> : vector<8xf32>
    %9 = vector.multi_reduction <add>, %8, %cst_9 [1] : vector<8x32xf32> to vector<8xf32>
    %10 = vector.shape_cast %9 : vector<8xf32> to vector<8x1xf32>
    %cst_10 = arith.constant 3.200000e+01 : f32
    %11 = vector.broadcast %cst_10 : f32 to vector<8x1xf32>
    %12 = arith.divf %10, %11 : vector<8x1xf32>
    %13 = vector.broadcast %12 : vector<8x1xf32> to vector<8x32xf32>
    %14 = arith.subf %8, %13 : vector<8x32xf32>
    %15 = vector.broadcast %12 : vector<8x1xf32> to vector<8x32xf32>
    %16 = arith.subf %8, %15 : vector<8x32xf32>
    %17 = arith.mulf %14, %16 : vector<8x32xf32>
    %cst_11 = arith.constant dense<0.000000e+00> : vector<8xf32>
    %18 = vector.multi_reduction <add>, %17, %cst_11 [1] : vector<8x32xf32> to vector<8xf32>
    %19 = vector.shape_cast %18 : vector<8xf32> to vector<8x1xf32>
    %cst_12 = arith.constant 3.200000e+01 : f32
    %20 = vector.broadcast %cst_12 : f32 to vector<8x1xf32>
    %21 = arith.divf %19, %20 : vector<8x1xf32>
    %22 = vector.broadcast %12 : vector<8x1xf32> to vector<8x32xf32>
    %23 = arith.subf %8, %22 : vector<8x32xf32>
    %cst_13 = arith.constant 9.99999974E-6 : f32
    %24 = vector.broadcast %cst_13 : f32 to vector<8x1xf32>
    %25 = arith.addf %21, %24 : vector<8x1xf32>
    %26 = math.rsqrt %25 : vector<8x1xf32>
    %27 = vector.broadcast %26 : vector<8x1xf32> to vector<8x32xf32>
    %28 = arith.mulf %23, %27 : vector<8x32xf32>
    %29 = vector.broadcast %4 : vector<1x32xf32> to vector<8x32xf32>
    %30 = arith.mulf %28, %29 : vector<8x32xf32>
    %31 = vector.broadcast %5 : vector<1x32xf32> to vector<8x32xf32>
    %32 = arith.addf %30, %31 : vector<8x32xf32>
    %33 = math.tanh %32 : vector<8x32xf32>
    %c64 = arith.constant 64 : index
    %c0_14 = arith.constant 0 : index
    %34 = vector.load %arg3[%c64, %c0_14] : memref<232x128xf32, #tpu.memory_space<vmem>>, vector<32x64xf32>
    %c96 = arith.constant 96 : index
    %c0_15 = arith.constant 0 : index
    %35 = vector.load %arg3[%c96, %c0_15] : memref<232x128xf32, #tpu.memory_space<vmem>>, vector<6x64xf32>
    %c104 = arith.constant 104 : index
    %c0_16 = arith.constant 0 : index
    %36 = vector.load %arg3[%c104, %c0_16] : memref<232x128xf32, #tpu.memory_space<vmem>>, vector<64x64xf32>
    %c168 = arith.constant 168 : index
    %c0_17 = arith.constant 0 : index
    %37 = vector.load %arg3[%c168, %c0_17] : memref<232x128xf32, #tpu.memory_space<vmem>>, vector<64x2xf32>
    %c3 = arith.constant 3 : index
    %c0_18 = arith.constant 0 : index
    %38 = vector.load %arg4[%c3, %c0_18] : memref<8x128xf32, #tpu.memory_space<vmem>>, vector<1x64xf32>
    %c4 = arith.constant 4 : index
    %c0_19 = arith.constant 0 : index
    %39 = vector.load %arg4[%c4, %c0_19] : memref<8x128xf32, #tpu.memory_space<vmem>>, vector<1x64xf32>
    %c5 = arith.constant 5 : index
    %c0_20 = arith.constant 0 : index
    %40 = vector.load %arg4[%c5, %c0_20] : memref<8x128xf32, #tpu.memory_space<vmem>>, vector<1x2xf32>
    %cst_21 = arith.constant dense<0.000000e+00> : vector<8x64xf32>
    %41 = tpu.matmul %33, %34, %cst_21 {dimension_numbers = #tpu.dot_dimension_numbers<[1], [0], [0], [1], [0, 0, 1, 1], [], []>} : vector<8x32xf32>, vector<32x64xf32>, vector<8x64xf32> -> vector<8x64xf32>
    %cst_22 = arith.constant dense<0.000000e+00> : vector<8x64xf32>
    %42 = tpu.matmul %1, %35, %cst_22 {dimension_numbers = #tpu.dot_dimension_numbers<[1], [0], [0], [1], [0, 0, 1, 1], [], []>} : vector<8x6xf32>, vector<6x64xf32>, vector<8x64xf32> -> vector<8x64xf32>
    %43 = arith.addf %41, %42 : vector<8x64xf32>
    %44 = vector.broadcast %38 : vector<1x64xf32> to vector<8x64xf32>
    %45 = arith.addf %43, %44 : vector<8x64xf32>
    %cst_23 = arith.constant 0.000000e+00 : f32
    %46 = vector.broadcast %cst_23 : f32 to vector<8x64xf32>
    %47 = arith.maximumf %45, %46 : vector<8x64xf32>
    %cst_24 = arith.constant dense<0.000000e+00> : vector<8x64xf32>
    %48 = tpu.matmul %47, %36, %cst_24 {dimension_numbers = #tpu.dot_dimension_numbers<[1], [0], [0], [1], [0, 0, 1, 1], [], []>} : vector<8x64xf32>, vector<64x64xf32>, vector<8x64xf32> -> vector<8x64xf32>
    %49 = vector.broadcast %39 : vector<1x64xf32> to vector<8x64xf32>
    %50 = arith.addf %48, %49 : vector<8x64xf32>
    %cst_25 = arith.constant 0.000000e+00 : f32
    %51 = vector.broadcast %cst_25 : f32 to vector<8x64xf32>
    %52 = arith.maximumf %50, %51 : vector<8x64xf32>
    %cst_26 = arith.constant dense<0.000000e+00> : vector<8x2xf32>
    %53 = tpu.matmul %52, %37, %cst_26 {dimension_numbers = #tpu.dot_dimension_numbers<[1], [0], [0], [1], [0, 0, 1, 1], [], []>} : vector<8x64xf32>, vector<64x2xf32>, vector<8x2xf32> -> vector<8x2xf32>
    %54 = vector.broadcast %40 : vector<1x2xf32> to vector<8x2xf32>
    %55 = arith.addf %53, %54 : vector<8x2xf32>
    %c0_27 = arith.constant 0 : index
    %c0_28 = arith.constant 0 : index
    %56 = vector.load %arg5[%c0_27, %c0_28] : memref<8x2xf32, #tpu.memory_space<vmem>>, vector<8x2xf32>
    tpu.vector_store %arg5[%c0_27, %c0_28], %55 {strides = array<i32>} : memref<8x2xf32, #tpu.memory_space<vmem>>, vector<8x2xf32>,
    return
  }
  func.func @transform_0(%arg0: i32) -> (i32, i32) {
    %c0_i32 = arith.constant 0 : i32
    %c0_i32_0 = arith.constant 0 : i32
    return %arg0, %c0_i32 : i32, i32
  }
  func.func @transform_1(%arg0: i32) -> (i32, i32) {
    %c0_i32 = arith.constant 0 : i32
    %c0_i32_0 = arith.constant 0 : i32
    return %arg0, %c0_i32 : i32, i32
  }
  func.func @transform_2(%arg0: i32) -> (i32, i32) {
    %c0_i32 = arith.constant 0 : i32
    %c0_i32_0 = arith.constant 0 : i32
    %c0_i32_1 = arith.constant 0 : i32
    return %c0_i32, %c0_i32_0 : i32, i32
  }
  func.func @transform_3(%arg0: i32) -> (i32, i32) {
    %c0_i32 = arith.constant 0 : i32
    %c0_i32_0 = arith.constant 0 : i32
    %c0_i32_1 = arith.constant 0 : i32
    return %c0_i32, %c0_i32_0 : i32, i32
  }
  func.func @transform_4(%arg0: i32) -> (i32, i32) {
    %c0_i32 = arith.constant 0 : i32
    %c0_i32_0 = arith.constant 0 : i32
    return %arg0, %c0_i32 : i32, i32
  }
}

</mosaic_0001>

<bundles_post_ra>
// kernel: tpu_custom_call.1
= control target key start
LH: loop header
LB: loop body
LE: loop exit
PB: predicated region body
PF: predicated region fallthrough
CT: control target
= control target key end

     0   :  { %9 = vsyncpa [#allocation3], 0  ;;  %s838_s0 = inlined_call_operand.hbm [shape: f32[8,64], index: 0, kind: input, shape index: {}]   ;;  %s839_s1 = inlined_call_operand.hbm [shape: f32[8,6], index: 1, kind: input, shape index: {}]   ;;  %s840_s2 = inlined_call_operand.hbm [shape: f32[232,128], index: 2, kind: input, shape index: {}]   ;;  %s841_s3 = inlined_call_operand.hbm [shape: f32[8,128], index: 3, kind: input, shape index: {}]   ;;  %s842_s4 = inlined_call_operand.vmem [shape: f32[8,2], index: 4, kind: output, shape index: {}]  }
   0x1   :  { %10 = vsyncpa [#allocation5], 0 }
   0x2   :  { %11 = vsyncpa [#allocation8], 0  ;;  %s745_s15 = smov [#allocation4]   ;;  %s746_s17 = smov [#allocation2]  }
   0x3   :  { %s28_s16 = sshll.u32 %s745_s15, 4  ;;  %s18_s18 = sshll.u32 %s746_s17, 4  ;;  %s29_s16 = int_to_ptr.vmem [resolvable:$true] %s28_s16  ;;  %s19_s18 = int_to_ptr.vmem [resolvable:$true] %s18_s18 }
   0x4   :  { %s667_s19 = scalar_lea.vmem %s29_s16, 128  ;;  %p672_p1 = scmp.lt.s32.totalorder %s29_s16, %s29_s16 }
   0x5   :  { %p668_p0 = scmp.ne.s32.totalorder %s29_s16, %s667_s19  ;;  %p673_p2 = scmp.lt.s32.totalorder %s667_s19, %s667_s19 }
   0x7   :  { %p674_p3 = por %p673_p2, %p672_p1 }
   0x9   :  { %p675_p4 = pnand %p674_p3, %p668_p0 }
   0xb   :  { %678 = shalt.err (!%p675_p4)
}
   0xc   :  { %31 = dma.hbm_to_vmem [thread:$0]  %s839_s1, 128, %s29_s16, [#allocation5]  }
   0xd   :  { %s687_s22 = scalar_lea.vmem %s19_s18, 128  ;;  %p692_p6 = scmp.lt.s32.totalorder %s19_s18, %s19_s18 }
   0xe   :  { %p688_p5 = scmp.ne.s32.totalorder %s19_s18, %s687_s22  ;;  %p693_p7 = scmp.lt.s32.totalorder %s687_s22, %s687_s22 }
  0x10   :  { %p694_p8 = por %p693_p7, %p692_p6 }
  0x12   :  { %p695_p9 = pnand %p694_p8, %p688_p5 }
  0x14   :  { %698 = shalt.err (!%p695_p9)
}
  0x15   :  { %21 = dma.hbm_to_vmem [thread:$0]  %s838_s0, 128, %s19_s18, [#allocation3]  }
  0x16   :  { %s747_s25 = smov [#allocation6]  }
  0x17   :  { %s37_s26 = sshll.u32 %s747_s25, 4  ;;  %s38_s26 = int_to_ptr.vmem [resolvable:$true] %s37_s26 }
  0x18   :  { %s707_s27 = scalar_lea.vmem %s38_s26, 3712  ;;  %p712_p11 = scmp.lt.s32.totalorder %s38_s26, %s38_s26 }
  0x19   :  { %p708_p10 = scmp.ne.s32.totalorder %s38_s26, %s707_s27  ;;  %p713_p12 = scmp.lt.s32.totalorder %s707_s27, %s707_s27 }
  0x1b   :  { %p714_p13 = por %p713_p12, %p712_p11 }
  0x1d   :  { %p715_p0 = pnand %p714_p13, %p708_p10 }
  0x1f   :  { %718 = shalt.err (!%p715_p0)
}
  0x20   :  { %s748_s1 = smov 128   ;;  %s749_s28 = smov 8  }
  0x21   :  { %43 = dma.hbm_to_vmem [thread:$0]  %s840_s2, 3712, %s38_s26, [#allocation5], %s748_s1, %s748_s1, %s749_s28  }
  0x22   :  { %s750_s5 = smov [#allocation7]  }
  0x23   :  { %s50_s6 = sshll.u32 %s750_s5, 4  ;;  %s51_s6 = int_to_ptr.vmem [resolvable:$true] %s50_s6 }
  0x24   :  { %s727_s0 = scalar_lea.vmem %s51_s6, 128  ;;  %p732_p2 = scmp.lt.s32.totalorder %s51_s6, %s51_s6 }
  0x25   :  { %p728_p1 = scmp.ne.s32.totalorder %s51_s6, %s727_s0  ;;  %p733_p3 = scmp.lt.s32.totalorder %s727_s0, %s727_s0 }
  0x27   :  { %p734_p4 = por %p733_p3, %p732_p2 }
  0x29   :  { %p735_p5 = pnand %p734_p4, %p728_p1 }
  0x2b   :  { %738 = shalt.err (!%p735_p5)
}
  0x2c   :  { %53 = dma.hbm_to_vmem [thread:$0]  %s841_s3, 128, %s51_s6, [#allocation8]  }
  0x2d   :  { %739 = dma.done.wait [#allocation3], 128  }
  0x2e   :  { %740 = vsyncadd [#allocation3], 4294967168 }
  0x2f   :  { %741 = dma.done.wait [#allocation5], 3840  }
  0x30   :  { %742 = vsyncadd [#allocation5], 4294963456 }
  0x31   :  { %743 = dma.done.wait [#allocation8], 128  }
  0x32   :  { %744 = vsyncadd [#allocation8], 4294967168  ;;  %v751_v0 = vmov 0.0   ;;  %vm752_vm0 = vmmov 0   ;;  %v75_v1 = vld [vmem:[#allocation6 + $0x38] sm:$0xff]  ;;  %v74_v2 = vld [vmem:[#allocation6 + $0x30] sm:$0xff] }
  0x33   :  { %574 = vmatprep.subr.mxu0 %v751_v0  ;;  %590 = vmatprep.mubr.msk.f32.mxu0 %vm752_vm0, %v751_v0  ;;  %v73_v3 = vld [vmem:[#allocation6 + $0x28] sm:$0xff]  ;;  %v72_v4 = vld [vmem:[#allocation6 + $0x20] sm:$0xff]  ;;  %v71_v5 = vld [vmem:[#allocation6 + $0x18] sm:$0xff]  ;;  %vm83_vm1 = vcmask 523264   ;;  %vm157_vm2 = vcmask 261120   ;;  %vm211_vm3 = vcmask 1045504  }
  0x34   :  { %593 = vmatprep.subr.mxu1 %v751_v0  ;;  %595 = vmatprep.mubr.msk.f32.mxu1 %vm752_vm0, %v751_v0  ;;  %v70_v6 = vld [vmem:[#allocation6 + $0x10] sm:$0xff]  ;;  %v69_v7 = vld [vmem:[#allocation6 + $0x8] sm:$0xff]  ;;  %v68_v8 = vld [vmem:[#allocation6] sm:$0xff]  ;;  %vm207_vm4 = vcmask 48128   ;;  %vm519_vm5 = vcmask 15360  }
  0x35   :  { %575 = vmatpush3.msra.mxu0 %v75_v1  ;;  %v66_v9 = vld [vmem:[#allocation2] sm:$0xff]  ;;  %v528_v10 = vld [vmem:[#allocation7] ss:$0 sm:$0xff]  ;;  %v187_v20 = vld [vmem:[#allocation6 + $0x60] sm:$0x3f] }
  0x36   :  { %576 = vmatprep.subr.mxu0 %v751_v0  ;;  %v67_v21 = vld [vmem:[#allocation4] sm:$0xff]  ;;  %594 = vmatpush3.msk.msra.mxu1 %vm211_vm3, %v187_v20  ;;  %v185_v23 = vld [vmem:[#allocation6 + $0x50] sm:$0xff]  ;;  %v184_v24 = vld [vmem:[#allocation6 + $0x48] sm:$0xff] }
  0x37   :  { %577 = vmatpush3.msra.mxu0 %v74_v2  ;;  %v186_v22 = vld [vmem:[#allocation6 + $0x58] sm:$0xff]  ;;  %596 = vmatmul.mubr.msk.f32.vlgmr.msra.gmra.mxu1 %vm207_vm4, %v67_v21  ;;  %v183_v25 = vld [vmem:[#allocation6 + $0x40] sm:$0xff]  ;;  %v530_v30 = vld [vmem:[#allocation7 + $0x1] ss:$0 sm:$0xff] }
  0x38   :  { %578 = vmatprep.subr.mxu0 %v751_v0  ;;  %598 = vmatprep.subr.mxu1 %v751_v0  ;;  %v531_v32 = vld [vmem:[#allocation7 + $0x2] ss:$0 sm:$0xff]  ;;  %v195_v35 = vld [vmem:[#allocation6 + $0xa0] sm:$0xff]  ;;  %v194_v37 = vld [vmem:[#allocation6 + $0x98] sm:$0xff] }
  0x39   :  { %579 = vmatpush3.msra.mxu0 %v73_v3  ;;  %599 = vmatpush3.msra.mxu1 %v186_v22  ;;  %v193_v38 = vld [vmem:[#allocation6 + $0x90] sm:$0xff]  ;;  %v192_v39 = vld [vmem:[#allocation6 + $0x88] sm:$0xff]  ;;  %v191_v42 = vld [vmem:[#allocation6 + $0x80] sm:$0xff] }
  0x3a   :  { %580 = vmatprep.subr.mxu0 %v751_v0  ;;  %606 = vmatprep.mubr.msk.f32.mxu1 %vm752_vm0, %v751_v0  ;;  %v190_v43 = vld [vmem:[#allocation6 + $0x78] sm:$0xff]  ;;  %v189_v44 = vld [vmem:[#allocation6 + $0x70] sm:$0xff]  ;;  %v188_v45 = vld [vmem:[#allocation6 + $0x68] sm:$0xff] }
  0x3b   :  { %581 = vmatpush3.msra.mxu0 %v72_v4  ;;  %600 = vmatprep.subr.mxu1 %v751_v0  ;;  %v203_v46 = vld [vmem:[#allocation6 + $0xe0] sm:$0xff]  ;;  %v202_v47 = vld [vmem:[#allocation6 + $0xd8] sm:$0xff]  ;;  %v201_v48 = vld [vmem:[#allocation6 + $0xd0] sm:$0xff] }
  0x3c   :  { %582 = vmatprep.subr.mxu0 %v751_v0  ;;  %601 = vmatpush3.msra.mxu1 %v185_v23  ;;  %v200_v49 = vld [vmem:[#allocation6 + $0xc8] sm:$0xff]  ;;  %v199_v50 = vld [vmem:[#allocation6 + $0xc0] sm:$0xff]  ;;  %v198_v57 = vld [vmem:[#allocation6 + $0xb8] sm:$0xff] }
  0x3d   :  { %583 = vmatpush3.msra.mxu0 %v71_v5  ;;  %602 = vmatprep.subr.mxu1 %v751_v0  ;;  %v535_v51 = vld [vmem:[#allocation7 + $0x3] ss:$0 sm:$0xff]  ;;  %v197_v58 = vld [vmem:[#allocation6 + $0xb0] sm:$0xff]  ;;  %v536_v60 = vld [vmem:[#allocation7 + $0x4] ss:$0 sm:$0xff] }
  0x3e   :  { %584 = vmatprep.subr.mxu0 %v751_v0  ;;  %603 = vmatpush3.msra.mxu1 %v184_v24  ;;  %v196_v59 = vld [vmem:[#allocation6 + $0xa8] sm:$0xff] }
  0x3f   :  { %585 = vmatpush3.msra.mxu0 %v70_v6  ;;  %604 = vmatprep.subr.mxu1 %v751_v0  ;;  %v538_v2 = vld [vmem:[#allocation7 + $0x5] ss:$0 sm:$0xff] }
  0x40   :  { %586 = vmatprep.subr.mxu0 %v751_v0  ;;  %605 = vmatpush3.msra.mxu1 %v183_v25 }
  0x41   :  { %587 = vmatpush3.msra.mxu0 %v69_v7  ;;  %609 = vmatprep.subr.mxu1 %v751_v0 }
  0x42   :  { %588 = vmatprep.subr.mxu0 %v751_v0 }
  0x43   :  { %589 = vmatpush3.msra.mxu0 %v68_v8 }
  0x44   :  { %591 = vmatmul.mubr.msk.f32.vlgmr.msra.gmra.mxu0 %vm83_vm1, %v66_v9  ;;  %628 = vmatprep.subr.mxu0 %v751_v0 }
  0x45   :  { %644 = vmatprep.mubr.msk.f32.mxu0 %vm752_vm0, %v751_v0  ;;  %629 = vmatpush3.msra.mxu0 %v203_v46 }
  0x46   :  { %630 = vmatprep.subr.mxu0 %v751_v0 }
  0x47   :  { %631 = vmatpush3.msra.mxu0 %v202_v47 }
  0x48   :  { %632 = vmatprep.subr.mxu0 %v751_v0 }
  0x49   :  { %633 = vmatpush3.msra.mxu0 %v201_v48 }
  0x4a   :  { %634 = vmatprep.subr.mxu0 %v751_v0 }
  0x4b   :  { %635 = vmatpush3.msra.mxu0 %v200_v49 }
  0x4c   :  { %636 = vmatprep.subr.mxu0 %v751_v0 }
  0x4d   :  { %637 = vmatpush3.msra.mxu0 %v199_v50 }
  0x4e   :  { %638 = vmatprep.subr.mxu0 %v751_v0 }
  0x4f   :  { %639 = vmatpush3.msra.mxu0 %v198_v57 }
  0x50   :  { %640 = vmatprep.subr.mxu0 %v751_v0 }
  0x51   :  { %641 = vmatpush3.msra.mxu0 %v197_v58 }
  0x52   :  { %642 = vmatprep.subr.mxu0 %v751_v0 }
  0x53   :  { %643 = vmatpush3.msra.mxu0 %v196_v59 }
  0xf7   :  { %v281_v40 = vpop.f32.mrf.mxu1 }
  0xf9   :  { %v597_v41 = vpop.f32.mrf.mxu1 }
 0x104   :  { %v153_v11 = vpop.f32.mrf.mxu0 }
 0x105   :  { %v154_v12 = vadd.f32 %v528_v10, %v153_v11 }
 0x106   :  { %v592_v13 = vpop.f32.mrf.mxu0 }
 0x107   :  { %v158_v14 = vsel %vm157_vm2, %v154_v12, 0.0 }
 0x108   :  { %159 = vadd.xlane.f32.xlu0 %v158_v14 }
 0x191   :  { %v160_v15 = vpop.xlane.xlu0 %159 }
 0x192   :  { %v162_v16 = vmul.f32 0.03125, %v160_v15 }
 0x194   :  { %v163_v17 = vsub.f32 %v154_v12, %v162_v16 }
 0x196   :  { %v164_v18 = vmul.f32 %v163_v17, %v163_v17 }
 0x198   :  { %v165_v19 = vsel %vm157_vm2, %v164_v18, 0.0 }
 0x199   :  { %166 = vadd.xlane.f32.xlu0 %v165_v19 }
 0x222   :  { %v167_v26 = vpop.xlane.xlu0 %166 }
 0x223   :  { %v168_v27 = vmul.f32 0.03125, %v167_v26 }
 0x225   :  { %v169_v28 = vadd.f32 1e-05, %v168_v27 }
 0x227   :  { %655 = vrsqrt.f32 %v169_v28 }
 0x234   :  { %v656_v29 = vpop.eup %655 }
 0x235   :  { %v171_v31 = vmul.f32 %v656_v29, %v163_v17 }
 0x237   :  { %v176_v33 = vmul.f32 %v530_v30, %v171_v31 }
 0x239   :  { %v181_v34 = vadd.f32 %v531_v32, %v176_v33 }
 0x23b   :  { %657 = vtanh.f32 %v181_v34 }
 0x248   :  { %v658_v36 = vpop.eup %657 }
 0x249   :  { %607 = vmatmul.mubr.msk.f32.vlgmr.msra.gmra.mxu1 %vm157_vm2, %v658_v36 }
 0x24a   :  { %610 = vmatpush3.msra.mxu1 %v195_v35  ;;  %625 = vmatprep.mubr.msk.f32.mxu1 %vm752_vm0, %v751_v0 }
 0x24b   :  { %611 = vmatprep.subr.mxu1 %v751_v0 }
 0x24c   :  { %612 = vmatpush3.msra.mxu1 %v194_v37 }
 0x24d   :  { %613 = vmatprep.subr.mxu1 %v751_v0 }
 0x24e   :  { %614 = vmatpush3.msra.mxu1 %v193_v38 }
 0x24f   :  { %615 = vmatprep.subr.mxu1 %v751_v0 }
 0x250   :  { %616 = vmatpush3.msra.mxu1 %v192_v39 }
 0x251   :  { %617 = vmatprep.subr.mxu1 %v751_v0 }
 0x252   :  { %618 = vmatpush3.msra.mxu1 %v191_v42 }
 0x253   :  { %619 = vmatprep.subr.mxu1 %v751_v0 }
 0x254   :  { %620 = vmatpush3.msra.mxu1 %v190_v43 }
 0x255   :  { %621 = vmatprep.subr.mxu1 %v751_v0 }
 0x256   :  { %622 = vmatpush3.msra.mxu1 %v189_v44 }
 0x257   :  { %623 = vmatprep.subr.mxu1 %v751_v0 }
 0x258   :  { %624 = vmatpush3.msra.mxu1 %v188_v45 }
 0x309   :  { %v354_v52 = vpop.f32.mrf.mxu1 }
 0x30a   :  { %v355_v53 = vadd.f32 %v354_v52, %v281_v40 }
 0x30b   :  { %v608_v54 = vpop.f32.mrf.mxu1 }
 0x30c   :  { %v362_v55 = vadd.f32 %v535_v51, %v355_v53 }
 0x30e   :  { %v363_v56 = vmax.f32 %v362_v55, 0.0 }
 0x310   :  { %626 = vmatmul.mubr.msk.f32.vlgmr.msra.gmra.mxu1 %vm83_vm1, %v363_v56 }
 0x3d0   :  { %v437_v61 = vpop.f32.mrf.mxu1 }
 0x3d1   :  { %v438_v62 = vadd.f32 %v536_v60, %v437_v61 }
 0x3d2   :  { %v627_v63 = vpop.f32.mrf.mxu1 }
 0x3d3   :  { %v441_v1 = vmax.f32 %v438_v62, 0.0 }
 0x3d5   :  { %645 = vmatmul.mubr.msk.f32.vlgmr.msra.gmra.mxu0 %vm83_vm1, %v441_v1 }
 0x495   :  { %v515_v3 = vpop.f32.mrf.mxu0 }
 0x496   :  { %v516_v4 = vadd.f32 %v538_v2, %v515_v3 }
 0x497   :  { %v646_v5 = vpop.f32.mrf.mxu0 }
 0x498   :  { %520 = vst.msk [vmem:[%s842_s4] sm:$0xff] %vm519_vm5, %v516_v4 }
 0x499   :  { %525 = vsyncpa [#allocation3], 1 }
 0x49a   :  { %526 = vsyncpa [#allocation5], 1 }
 0x49b   :  { %527 = vsyncpa [#allocation8], 1 }

</bundles_post_ra>
